<compile_context>
chip_gen: v5e
topology: v5e:2x2
jax: 0.10.0
libtpu: 0.0.40
codegen_flags: <defaults>
</compile_context>

<pallas_src>
import numpy as np
import jax
import jax.numpy as jnp
from jax.experimental import pallas as pl
from jax.experimental.pallas import tpu as pltpu

LANE = 128
SUB = 8
_DEF_TILE_M = 512


def _round_up(x, m):
    return (x + m - 1) // m * m


def _vmem_limit(tile_bytes):
    # double-buffered operands + slack; clamp so it is legal on v7x (64 MiB).
    return int(min(max(2 * tile_bytes + (8 << 20), 32 << 20), 64 << 20))


# ---------------------------------------------------------------------------
# Pass 1 kernel: conv-as-matmul (MXU) + per-tile channel sum / sumsq (f32)
# ---------------------------------------------------------------------------
def _conv_stats_kernel(p_ref, w_ref, y_ref, stats_ref):
    acc = jnp.dot(p_ref[...], w_ref[...], preferred_element_type=jnp.float32)
    y_ref[...] = acc.astype(y_ref.dtype)
    s = jnp.sum(acc, axis=0, keepdims=True)            # (1, Cp)
    ss = jnp.sum(acc * acc, axis=0, keepdims=True)     # (1, Cp)
    rows = jax.lax.broadcasted_iota(jnp.int32, (SUB, acc.shape[1]), 0)
    stats = jnp.where(rows == 0, s, jnp.where(rows == 1, ss, 0.0))
    stats_ref[0] = stats


# ---------------------------------------------------------------------------
# Pass 2 kernels: per-tile BN affine (+ residual affine) + ReLU epilogue
# ---------------------------------------------------------------------------
def _bn_relu_kernel(y_ref, sc_ref, sh_ref, o_ref):
    y = y_ref[...].astype(jnp.float32)
    o_ref[...] = jnp.maximum(y * sc_ref[...] + sh_ref[...], 0.0).astype(o_ref.dtype)


def _bn_add_relu_kernel(y_ref, sc_ref, sh_ref, r_ref, rsc_ref, rsh_ref, o_ref):
    y = y_ref[...].astype(jnp.float32) * sc_ref[...] + sh_ref[...]
    r = r_ref[...].astype(jnp.float32) * rsc_ref[...] + rsh_ref[...]
    o_ref[...] = jnp.maximum(y + r, 0.0).astype(o_ref.dtype)


# ---------------------------------------------------------------------------
# JAX glue: im2col / weight reshape (layout plumbing only)
# ---------------------------------------------------------------------------
def _im2col(x_nhwc, kh, kw, stride, padding):
    N, H, W, C = x_nhwc.shape
    xp = jnp.pad(x_nhwc, ((0, 0), (padding, padding), (padding, padding), (0, 0)))
    Ho = (H + 2 * padding - kh) // stride + 1
    Wo = (W + 2 * padding - kw) // stride + 1
    cols = []
    for i in range(kh):
        for j in range(kw):
            cols.append(xp[:, i:i + stride * Ho:stride, j:j + stride * Wo:stride, :])
    patches = jnp.concatenate(cols, axis=-1)            # (N, Ho, Wo, kh*kw*C)
    return patches.reshape(N * Ho * Wo, kh * kw * C), (N, Ho, Wo)


def _w_matrix(w_oihw, cp):
    # (Cout, Cin, KH, KW) -> (KH*KW*Cin, Cp)  (tap-major, channel-minor, lane-padded)
    cout, cin, kh, kw = w_oihw.shape
    w = jnp.transpose(w_oihw, (2, 3, 1, 0)).reshape(kh * kw * cin, cout)
    return jnp.pad(w, ((0, 0), (0, cp - cout)))


# ---------------------------------------------------------------------------
# Pass 1 wrapper: tiled conv matmul + batch statistics
# ---------------------------------------------------------------------------
def conv2d_stats(x_nhwc, w_oihw, *, stride, padding, compute_dtype,
                 tile_m=_DEF_TILE_M):
    cout, _, kh, kw = w_oihw.shape
    cp = _round_up(cout, LANE)
    patches, (N, Ho, Wo) = _im2col(x_nhwc, kh, kw, stride, padding)
    M, K = patches.shape
    tm = min(tile_m, _round_up(M, SUB))
    m_pad = _round_up(M, tm)
    n_tiles = m_pad // tm

    patches = jnp.pad(patches, ((0, m_pad - M), (0, 0))).astype(compute_dtype)
    w_mat = _w_matrix(w_oihw, cp).astype(compute_dtype)

    dsz = jnp.dtype(compute_dtype).itemsize
    tile_bytes = tm * K * dsz + K * cp * dsz + tm * cp * dsz + SUB * cp * 4

    y, stats = pl.pallas_call(
        _conv_stats_kernel,
        out_shape=(
            jax.ShapeDtypeStruct((m_pad, cp), compute_dtype),
            jax.ShapeDtypeStruct((n_tiles, SUB, cp), jnp.float32),
        ),
        grid_spec=pltpu.PrefetchScalarGridSpec(
            num_scalar_prefetch=0,
            grid=(n_tiles,),
            in_specs=[
                pl.BlockSpec((tm, K), lambda i: (i, 0)),
                pl.BlockSpec((K, cp), lambda i: (0, 0)),
            ],
            out_specs=[
                pl.BlockSpec((tm, cp), lambda i: (i, 0)),
                pl.BlockSpec((1, SUB, cp), lambda i: (i, 0, 0)),
            ],
        ),
        compiler_params=pltpu.CompilerParams(
            dimension_semantics=("parallel",),
            vmem_limit_bytes=_vmem_limit(tile_bytes),
        ),
        cost_estimate=pl.CostEstimate(
            flops=2 * m_pad * K * cp,
            transcendentals=0,
            bytes_accessed=(m_pad * K + K * cp) * dsz + m_pad * cp * dsz,
        ),
    )(patches, w_mat)

    totals = jnp.sum(stats, axis=0)                     # (8, cp)
    mean = totals[0] / M
    var = jnp.maximum(totals[1] / M - mean * mean, 0.0)  # biased variance
    meta = dict(N=N, Ho=Ho, Wo=Wo, M=M, m_pad=m_pad, tm=tm, cout=cout, cp=cp)
    return y, mean, var, meta


def _bn_affine(gamma, beta, mean, var, cp, eps):
    cout = gamma.shape[0]
    g = jnp.pad(gamma.astype(jnp.float32), (0, cp - cout))
    b = jnp.pad(beta.astype(jnp.float32), (0, cp - cout))
    scale = g * jax.lax.rsqrt(var + eps)
    shift = b - mean * scale
    return scale.reshape(1, cp), shift.reshape(1, cp)


# ---------------------------------------------------------------------------
# Pass 2 wrappers: tiled epilogue
# ---------------------------------------------------------------------------
def _epilogue_call(kernel, operands, meta, out_dtype):
    tm, m_pad, cp = meta["tm"], meta["m_pad"], meta["cp"]
    n_tiles = m_pad // tm

    in_specs = []
    tile_bytes = tm * cp * jnp.dtype(out_dtype).itemsize
    for op in operands:
        if op.shape[0] == m_pad:
            in_specs.append(pl.BlockSpec((tm, cp), lambda i: (i, 0)))
            tile_bytes += tm * cp * op.dtype.itemsize
        else:  # per-channel scale/shift vectors
            in_specs.append(pl.BlockSpec((1, cp), lambda i: (0, 0)))
            tile_bytes += cp * op.dtype.itemsize

    return pl.pallas_call(
        kernel,
        out_shape=jax.ShapeDtypeStruct((m_pad, cp), out_dtype),
        grid_spec=pltpu.PrefetchScalarGridSpec(
            num_scalar_prefetch=0,
            grid=(n_tiles,),
            in_specs=in_specs,
            out_specs=pl.BlockSpec((tm, cp), lambda i: (i, 0)),
        ),
        compiler_params=pltpu.CompilerParams(
            dimension_semantics=("parallel",),
            vmem_limit_bytes=_vmem_limit(tile_bytes),
        ),
    )(*operands)


def bn_relu(y, scale, shift, meta, out_dtype):
    out = _epilogue_call(_bn_relu_kernel, (y, scale, shift), meta, out_dtype)
    N, Ho, Wo, M, cout = meta["N"], meta["Ho"], meta["Wo"], meta["M"], meta["cout"]
    return out[:M, :cout].reshape(N, Ho, Wo, cout)


def bn_add_relu(y, scale, shift, res, rscale, rshift, meta, out_dtype):
    out = _epilogue_call(_bn_add_relu_kernel,
                         (y, scale, shift, res, rscale, rshift), meta, out_dtype)
    N, Ho, Wo, M, cout = meta["N"], meta["Ho"], meta["Wo"], meta["M"], meta["cout"]
    return out[:M, :cout].reshape(N, Ho, Wo, cout)


# ---------------------------------------------------------------------------
# BasicBlock (expansion = 1)
# ---------------------------------------------------------------------------
class BasicBlockPallas:
    expansion = 1

    def __init__(self, key, in_planes: int, planes: int, stride: int = 1,
                 compute_dtype=jnp.float32, eps: float = 1e-5):
        self.in_planes, self.planes, self.stride = in_planes, planes, stride
        self.compute_dtype, self.eps = compute_dtype, eps
        k = jax.random.split(key, 8)
        s = 0.1
        self.w1 = s * jax.random.normal(k[0], (planes, in_planes, 3, 3), jnp.float32)
        self.g1 = 1.0 + 0.1 * jax.random.normal(k[1], (planes,), jnp.float32)
        self.b1 = 0.1 * jax.random.normal(k[2], (planes,), jnp.float32)
        self.w2 = s * jax.random.normal(k[3], (planes, planes, 3, 3), jnp.float32)
        self.g2 = 1.0 + 0.1 * jax.random.normal(k[4], (planes,), jnp.float32)
        self.b2 = 0.1 * jax.random.normal(k[5], (planes,), jnp.float32)
        self.has_shortcut = (stride != 1) or (in_planes != self.expansion * planes)
        if self.has_shortcut:
            self.wsc = s * jax.random.normal(
                k[6], (self.expansion * planes, in_planes, 1, 1), jnp.float32)
            self.gsc = 1.0 + 0.1 * jax.random.normal(
                k[7], (self.expansion * planes,), jnp.float32)
            self.bsc = jnp.zeros((self.expansion * planes,), jnp.float32)

    def __call__(self, x_nhwc, t=0):
        # TODO(synk): task-conditioned masks (t) ignored (all-ones).
        cd = self.compute_dtype

        # conv1 + bn1 + relu
        y1, m1, v1, meta1 = conv2d_stats(x_nhwc, self.w1, stride=self.stride,
                                         padding=1, compute_dtype=cd)
        s1, sh1 = _bn_affine(self.g1, self.b1, m1, v1, meta1["cp"], self.eps)
        out1 = bn_relu(y1, s1, sh1, meta1, cd)

        # conv2 (bn2 folded into the final epilogue)
        y2, m2, v2, meta2 = conv2d_stats(out1, self.w2, stride=1, padding=1,
                                         compute_dtype=cd)
        s2, sh2 = _bn_affine(self.g2, self.b2, m2, v2, meta2["cp"], self.eps)

        # shortcut branch (its BN is applied inside the fused epilogue)
        if self.has_shortcut:
            ysc, msc, vsc, metasc = conv2d_stats(x_nhwc, self.wsc,
                                                 stride=self.stride, padding=0,
                                                 compute_dtype=cd)
            assert metasc["m_pad"] == meta2["m_pad"] and metasc["cp"] == meta2["cp"]
            rsc, rsh = _bn_affine(self.gsc, self.bsc, msc, vsc,
                                  metasc["cp"], self.eps)
            res = ysc
        else:
            M, m_pad, cp = meta2["M"], meta2["m_pad"], meta2["cp"]
            res = x_nhwc.reshape(M, -1)
            res = jnp.pad(res, ((0, m_pad - M), (0, cp - res.shape[1]))).astype(cd)
            rsc = jnp.ones((1, cp), jnp.float32)
            rsh = jnp.zeros((1, cp), jnp.float32)

        # relu(bn2(conv2) + shortcut)
        return bn_add_relu(y2, s2, sh2, res, rsc, rsh, meta2, x_nhwc.dtype)


# ---------------------------------------------------------------------------
# Pure-JAX reference (verification only)
# ---------------------------------------------------------------------------
def _conv_ref(x_nhwc, w_oihw, stride, padding):
    return jax.lax.conv_general_dilated(
        x_nhwc, jnp.transpose(w_oihw, (2, 3, 1, 0)),
        window_strides=(stride, stride),
        padding=[(padding, padding), (padding, padding)],
        dimension_numbers=('NHWC', 'HWIO', 'NHWC'))


def _bn_ref(y, gamma, beta, eps=1e-5):
    mean = jnp.mean(y, axis=(0, 1, 2), keepdims=True)
    var = jnp.mean(jnp.square(y - mean), axis=(0, 1, 2), keepdims=True)
    return (y - mean) * jax.lax.rsqrt(var + eps) * gamma + beta


def _block_ref(block: BasicBlockPallas, x_nhwc):
    o = jax.nn.relu(_bn_ref(_conv_ref(x_nhwc, block.w1, block.stride, 1),
                            block.g1, block.b1))
    o = _bn_ref(_conv_ref(o, block.w2, 1, 1), block.g2, block.b2)
    if block.has_shortcut:
        sc = _bn_ref(_conv_ref(x_nhwc, block.wsc, block.stride, 0),
                     block.gsc, block.bsc)
    else:
        sc = x_nhwc
    return jax.nn.relu(o + sc)


# ---------------------------------------------------------------------------
if __name__ == "__main__":
    key = jax.random.PRNGKey(0)
    k_x1, k_x2, k_b1, k_b2 = jax.random.split(key, 4)

    # Case 1: downsampling block with 1x1-conv shortcut (in=4, planes=8, stride=2)
    x1_nchw = jax.random.normal(k_x1, (2, 4, 16, 16), jnp.float32)
    x1 = jnp.transpose(x1_nchw, (0, 2, 3, 1))           # NCHW -> NHWC
    blk1 = BasicBlockPallas(k_b1, in_planes=4, planes=8, stride=2)
    y1 = jax.block_until_ready(blk1(x1, t=0))
    assert y1.shape == (2, 8, 8, 8)
    np.testing.assert_allclose(np.asarray(y1), np.asarray(_block_ref(blk1, x1)),
                               rtol=1e-4, atol=1e-4)

    # Case 2: identity-shortcut block (in=planes=8, stride=1)
    x2_nchw = jax.random.normal(k_x2, (2, 8, 16, 16), jnp.float32)
    x2 = jnp.transpose(x2_nchw, (0, 2, 3, 1))
    blk2 = BasicBlockPallas(k_b2, in_planes=8, planes=8, stride=1)
    y2 = jax.block_until_ready(blk2(x2, t=0))
    assert y2.shape == (2, 16, 16, 8)
    ref2 = _block_ref(blk2, x2)
    np.testing.assert_allclose(np.asarray(y2), np.asarray(ref2),
                               rtol=1e-4, atol=1e-4)

    # Case 3: bf16 compute path (same weights as blk2), loose statistical check.
    blk2_bf = BasicBlockPallas(k_b2, in_planes=8, planes=8, stride=1,
                               compute_dtype=jnp.bfloat16)
    y2_bf = jax.block_until_ready(blk2_bf(x2, t=0))
    assert y2_bf.shape == (2, 16, 16, 8)
    assert bool(jnp.all(jnp.isfinite(y2_bf)))
    assert float(jnp.mean(jnp.abs(y2_bf.astype(jnp.float32) - ref2))) < 0.05

    print("KERNEL_OK")
</pallas_src>

<mosaic_0001>
module attributes {stable_mosaic.version = 11 : i64} {
  func.func @_conv_stats_kernel(%arg0: i32, %arg1: memref<128x36xf32, #tpu.memory_space<vmem>>, %arg2: memref<36x128xf32, #tpu.memory_space<vmem>>, %arg3: memref<128x128xf32, #tpu.memory_space<vmem>>, %arg4: memref<1x8x128xf32, #tpu.memory_space<vmem>>) attributes {dimension_semantics = [#tpu.dimension_semantics<parallel>], iteration_bounds = array<i64: 1>, scalar_prefetch = 0 : i64, scratch_operands = 0 : i64, tpu.core_type = #tpu.core_type<tc>, window_params = [{transform_indices = @transform_0, window_bounds = array<i64: 128, 36>}, {pipeline_mode = #tpu.pipeline_mode<synchronous>, transform_indices = @transform_1, window_bounds = array<i64: 36, 128>}, {transform_indices = @transform_2, window_bounds = array<i64: 128, 128>}, {transform_indices = @transform_3, window_bounds = array<i64: 1, 8, 128>}]} {
    %c0 = arith.constant 0 : index
    %c0_0 = arith.constant 0 : index
    %0 = vector.load %arg1[%c0, %c0_0] : memref<128x36xf32, #tpu.memory_space<vmem>>, vector<128x36xf32>
    %c0_1 = arith.constant 0 : index
    %c0_2 = arith.constant 0 : index
    %1 = vector.load %arg2[%c0_1, %c0_2] : memref<36x128xf32, #tpu.memory_space<vmem>>, vector<36x128xf32>
    %cst = arith.constant dense<0.000000e+00> : vector<128x128xf32>
    %2 = tpu.matmul %0, %1, %cst {dimension_numbers = #tpu.dot_dimension_numbers<[1], [0], [0], [1], [0, 0, 1, 1], [], []>} : vector<128x36xf32>, vector<36x128xf32>, vector<128x128xf32> -> vector<128x128xf32>
    %c0_3 = arith.constant 0 : index
    %c0_4 = arith.constant 0 : index
    %3 = vector.load %arg3[%c0_3, %c0_4] : memref<128x128xf32, #tpu.memory_space<vmem>>, vector<128x128xf32>
    tpu.vector_store %arg3[%c0_3, %c0_4], %2 {strides = array<i32>} : memref<128x128xf32, #tpu.memory_space<vmem>>, vector<128x128xf32>,
    %cst_5 = arith.constant dense<0.000000e+00> : vector<128xf32>
    %4 = vector.multi_reduction <add>, %2, %cst_5 [0] : vector<128x128xf32> to vector<128xf32>
    %5 = vector.shape_cast %4 : vector<128xf32> to vector<1x128xf32>
    %6 = arith.mulf %2, %2 : vector<128x128xf32>
    %cst_6 = arith.constant dense<0.000000e+00> : vector<128xf32>
    %7 = vector.multi_reduction <add>, %6, %cst_6 [0] : vector<128x128xf32> to vector<128xf32>
    %8 = vector.shape_cast %7 : vector<128xf32> to vector<1x128xf32>
    %9 = tpu.iota {dimensions = array<i32: 0>} : vector<8x128xi32>
    %c0_i32 = arith.constant 0 : i32
    %10 = vector.broadcast %c0_i32 : i32 to vector<8x128xi32>
    %11 = arith.cmpi eq, %9, %10 : vector<8x128xi32>
    %c1_i32 = arith.constant 1 : i32
    %12 = vector.broadcast %c1_i32 : i32 to vector<8x128xi32>
    %13 = arith.cmpi eq, %9, %12 : vector<8x128xi32>
    %cst_7 = arith.constant 0.000000e+00 : f32
    %14 = vector.shape_cast %8 : vector<1x128xf32> to vector<1x128xf32>
    %15 = vector.broadcast %14 : vector<1x128xf32> to vector<8x128xf32>
    %16 = vector.broadcast %cst_7 : f32 to vector<8x128xf32>
    %17 = arith.select %13, %15, %16 : vector<8x128xi1>, vector<8x128xf32>
    %18 = vector.shape_cast %5 : vector<1x128xf32> to vector<1x128xf32>
    %19 = vector.broadcast %18 : vector<1x128xf32> to vector<8x128xf32>
    %20 = arith.select %11, %19, %17 : vector<8x128xi1>, vector<8x128xf32>
    %c0_8 = arith.constant 0 : index
    %c0_9 = arith.constant 0 : index
    %c0_10 = arith.constant 0 : index
    %21 = vector.load %arg4[%c0_8, %c0_9, %c0_10] : memref<1x8x128xf32, #tpu.memory_space<vmem>>, vector<1x8x128xf32>
    %22 = vector.shape_cast %21 : vector<1x8x128xf32> to vector<8x128xf32>
    %23 = vector.shape_cast %20 : vector<8x128xf32> to vector<1x8x128xf32>
    tpu.vector_store %arg4[%c0_8, %c0_9, %c0_10], %23 {strides = array<i32>} : memref<1x8x128xf32, #tpu.memory_space<vmem>>, vector<1x8x128xf32>,
    return
  }
  func.func @transform_0(%arg0: i32) -> (i32, i32) {
    %c0_i32 = arith.constant 0 : i32
    %c0_i32_0 = arith.constant 0 : i32
    return %arg0, %c0_i32 : i32, i32
  }
  func.func @transform_1(%arg0: i32) -> (i32, i32) {
    %c0_i32 = arith.constant 0 : i32
    %c0_i32_0 = arith.constant 0 : i32
    %c0_i32_1 = arith.constant 0 : i32
    return %c0_i32, %c0_i32_0 : i32, i32
  }
  func.func @transform_2(%arg0: i32) -> (i32, i32) {
    %c0_i32 = arith.constant 0 : i32
    %c0_i32_0 = arith.constant 0 : i32
    return %arg0, %c0_i32 : i32, i32
  }
  func.func @transform_3(%arg0: i32) -> (i32, i32, i32) {
    %c0_i32 = arith.constant 0 : i32
    %c0_i32_0 = arith.constant 0 : i32
    %c0_i32_1 = arith.constant 0 : i32
    return %arg0, %c0_i32, %c0_i32_0 : i32, i32, i32
  }
}

</mosaic_0001>

<bundles_post_ra>
// kernel: tpu_custom_call.1
= control target key start
LH: loop header
LB: loop body
LE: loop exit
PB: predicated region body
PF: predicated region fallthrough
CT: control target
= control target key end

     0   :  { %9 = vsyncpa [#allocation3], 0  ;;  %vm85_vm0 = vcmask 1043456   ;;  %vm36_vm1 = vcmask 293888   ;;  %s472_s0 = inlined_call_operand.vmem [shape: f32[128,36], index: 0, kind: input, shape index: {}]   ;;  %s473_s1 = inlined_call_operand.vmem [shape: f32[36,128], index: 1, kind: input, shape index: {}]   ;;  %s474_s2 = inlined_call_operand.hbm [shape: f32[128,128], index: 2, kind: output, shape index: {0}]   ;;  %s475_s3 = inlined_call_operand.hbm [shape: f32[1,8,128], index: 3, kind: output, shape index: {1}]  }
   0x1   :  { %v35_v0 = vld [vmem:[%s473_s1 + $0x20] sm:$0xf]  ;;  %v34_v1 = vld [vmem:[%s473_s1 + $0x18] sm:$0xff]  ;;  %v33_v2 = vld [vmem:[%s473_s1 + $0x10] sm:$0xff] }
   0x2   :  { %269 = vmatpush.msk.msra.mxu0 %vm85_vm0, %v35_v0  ;;  %286 = vmatpush.msk.msra.mxu1 %vm85_vm0, %v35_v0  ;;  %v32_v3 = vld [vmem:[%s473_s1 + $0x8] sm:$0xff]  ;;  %v31_v4 = vld [vmem:[%s473_s1] sm:$0xff] }
   0x3   :  { %287 = vmatpush.msk.msra.mxu2 %vm85_vm0, %v35_v0  ;;  %288 = vmatpush.msk.msra.mxu3 %vm85_vm0, %v35_v0  ;;  %v15_v5 = vld [vmem:[%s472_s0] sm:$0xff] }
   0x4   :  { %101 = vmatpush.msra.mxu0 %v34_v1  ;;  %289 = vmatpush.msra.mxu1 %v34_v1  ;;  %v19_v6 = vld [vmem:[%s472_s0 + $0x20] sm:$0xff] }
   0x5   :  { %290 = vmatpush.msra.mxu2 %v34_v1  ;;  %291 = vmatpush.msra.mxu3 %v34_v1 }
   0x6   :  { %102 = vmatpush.msra.mxu0 %v33_v2  ;;  %292 = vmatpush.msra.mxu1 %v33_v2 }
   0x7   :  { %293 = vmatpush.msra.mxu2 %v33_v2  ;;  %294 = vmatpush.msra.mxu3 %v33_v2 }
   0x8   :  { %103 = vmatpush.msra.mxu0 %v32_v3  ;;  %295 = vmatpush.msra.mxu1 %v32_v3 }
   0x9   :  { %10 = vsyncpa [#allocation5], 0  ;;  %296 = vmatpush.msra.mxu2 %v32_v3  ;;  %297 = vmatpush.msra.mxu3 %v32_v3  ;;  %v23_v7 = vld [vmem:[%s472_s0 + $0x40] sm:$0xff]  ;;  %v16_v9 = vld [vmem:[%s472_s0 + $0x8] sm:$0xff]  ;;  %s241_s28 = sshll.u32 %s474_s2, 4  ;;  %s358_s29 = smov 128   ;;  %s242_s28 = int_to_ptr.hbm [resolvable:$true] %s241_s28 }
   0xa   :  { %104 = vmatpush.msra.mxu0 %v31_v4  ;;  %298 = vmatpush.msra.mxu1 %v31_v4  ;;  %v27_v8 = vld [vmem:[%s472_s0 + $0x60] sm:$0xff]  ;;  %v20_v10 = vld [vmem:[%s472_s0 + $0x28] sm:$0xff]  ;;  %v17_v13 = vld [vmem:[%s472_s0 + $0x10] sm:$0xff]  ;;  %s359_s30 = smov 8   ;;  %s360_s2 = smov [#allocation4]  }
   0xb   :  { %270 = vmatmul.msk.f32.vlgmr.msra.gmra.mxu0 %vm36_vm1, %v15_v5  ;;  %274 = vmatmul.msk.f32.vlgmr.msra.gmra.mxu1 %vm36_vm1, %v19_v6  ;;  %v24_v11 = vld [vmem:[%s472_s0 + $0x48] sm:$0xff]  ;;  %v21_v14 = vld [vmem:[%s472_s0 + $0x30] sm:$0xff]  ;;  %v18_v17 = vld [vmem:[%s472_s0 + $0x18] sm:$0xff]  ;;  %s253_s4 = sshll.u32 %s360_s2, 4  ;;  %s255_s7 = sshll.u32 %s475_s3, 4  ;;  %s254_s4 = int_to_ptr.vmem [resolvable:$true] %s253_s4  ;;  %s256_s7 = int_to_ptr.hbm [resolvable:$true] %s255_s7 }
   0xc   :  { %299 = vmatpush.msra.mxu2 %v31_v4  ;;  %300 = vmatpush.msra.mxu3 %v31_v4  ;;  %v28_v12 = vld [vmem:[%s472_s0 + $0x68] sm:$0xff]  ;;  %v25_v15 = vld [vmem:[%s472_s0 + $0x50] sm:$0xff]  ;;  %v22_v18 = vld [vmem:[%s472_s0 + $0x38] sm:$0xff] }
   0xd   :  { %278 = vmatmul.msk.f32.vlgmr.msra.gmra.mxu2 %vm36_vm1, %v23_v7  ;;  %282 = vmatmul.msk.f32.vlgmr.msra.gmra.mxu3 %vm36_vm1, %v27_v8  ;;  %v29_v16 = vld [vmem:[%s472_s0 + $0x70] sm:$0xff]  ;;  %v26_v19 = vld [vmem:[%s472_s0 + $0x58] sm:$0xff] }
   0xe   :  { %v30_v20 = vld [vmem:[%s472_s0 + $0x78] sm:$0xff]  ;;  %s357_s0 = smov [#allocation2]  }
   0xf   :  { %s239_s26 = sshll.u32 %s357_s0, 4  ;;  %s240_s26 = int_to_ptr.vmem [resolvable:$true] %s239_s26 }
  0x13   :  { %271 = vmatmul.msk.f32.gmra.mxu0 %vm36_vm1, %v16_v9  ;;  %275 = vmatmul.msk.f32.gmra.mxu1 %vm36_vm1, %v20_v10 }
  0x15   :  { %279 = vmatmul.msk.f32.gmra.mxu2 %vm36_vm1, %v24_v11  ;;  %283 = vmatmul.msk.f32.gmra.mxu3 %vm36_vm1, %v28_v12 }
  0x1b   :  { %272 = vmatmul.msk.f32.gmra.mxu0 %vm36_vm1, %v17_v13  ;;  %276 = vmatmul.msk.f32.gmra.mxu1 %vm36_vm1, %v21_v14 }
  0x1d   :  { %280 = vmatmul.msk.f32.gmra.mxu2 %vm36_vm1, %v25_v15  ;;  %284 = vmatmul.msk.f32.gmra.mxu3 %vm36_vm1, %v29_v16 }
  0x23   :  { %273 = vmatmul.msk.f32.gmra.mxu0 %vm36_vm1, %v18_v17  ;;  %277 = vmatmul.msk.f32.gmra.mxu1 %vm36_vm1, %v22_v18 }
  0x25   :  { %281 = vmatmul.msk.f32.gmra.mxu2 %vm36_vm1, %v26_v19  ;;  %285 = vmatmul.msk.f32.gmra.mxu3 %vm36_vm1, %v30_v20 }
  0x88   :  { %v106_v21 = vpop.f32.mrf.mxu0  ;;  %v118_v22 = vpop.f32.mrf.mxu1 }
  0x89   :  { %154 = vst [vmem:[#allocation2] sm:$0xff] %v106_v21  ;;  %v191_v32 = vmul.f32 %v106_v21, %v106_v21  ;;  %v195_v44 = vmul.f32 %v118_v22, %v118_v22 }
  0x8a   :  { %158 = vst [vmem:[#allocation2 + $0x20] sm:$0xff] %v118_v22 }
  0x90   :  { %v109_v23 = vpop.f32.mrf.mxu0  ;;  %v121_v24 = vpop.f32.mrf.mxu1 }
  0x91   :  { %155 = vst [vmem:[#allocation2 + $0x8] sm:$0xff] %v109_v23  ;;  %v130_v25 = vpop.f32.mrf.mxu2  ;;  %v460_v26 = vpop.f32.mrf.mxu3  ;;  %v192_v31 = vmul.f32 %v109_v23, %v109_v23  ;;  %v170_v33 = vadd.f32 %v109_v23, %v106_v21  ;;  %v196_v47 = vmul.f32 %v121_v24, %v121_v24 }
  0x92   :  { %159 = vst [vmem:[#allocation2 + $0x28] sm:$0xff] %v121_v24  ;;  %v199_v58 = vmul.f32 %v130_v25, %v130_v25  ;;  %v203_v6 = vmul.f32 %v460_v26, %v460_v26 }
  0x93   :  { %162 = vst [vmem:[#allocation2 + $0x40] sm:$0xff] %v130_v25  ;;  %v207_v35 = vadd.f32 %v192_v31, %v191_v32 }
  0x94   :  { %166 = vst [vmem:[#allocation2 + $0x60] sm:$0xff] %v460_v26 }
  0x98   :  { %v112_v27 = vpop.f32.mrf.mxu0  ;;  %v124_v28 = vpop.f32.mrf.mxu1 }
  0x99   :  { %156 = vst [vmem:[#allocation2 + $0x10] sm:$0xff] %v112_v27  ;;  %v133_v29 = vpop.f32.mrf.mxu2  ;;  %v145_v30 = vpop.f32.mrf.mxu3  ;;  %v193_v34 = vmul.f32 %v112_v27, %v112_v27  ;;  %v171_v36 = vadd.f32 %v170_v33, %v112_v27  ;;  %v197_v51 = vmul.f32 %v124_v28, %v124_v28 }
  0x9a   :  { %160 = vst [vmem:[#allocation2 + $0x30] sm:$0xff] %v124_v28  ;;  %v200_v61 = vmul.f32 %v133_v29, %v133_v29  ;;  %v204_v9 = vmul.f32 %v145_v30, %v145_v30 }
  0x9b   :  { %163 = vst [vmem:[#allocation2 + $0x48] sm:$0xff] %v133_v29  ;;  %v208_v39 = vadd.f32 %v207_v35, %v193_v34 }
  0x9c   :  { %167 = vst [vmem:[#allocation2 + $0x68] sm:$0xff] %v145_v30 }
  0xa0   :  { %v115_v37 = vpop.f32.mrf.mxu0  ;;  %v127_v38 = vpop.f32.mrf.mxu1 }
  0xa1   :  { %157 = vst [vmem:[#allocation2 + $0x18] sm:$0xff] %v115_v37  ;;  %v172_v40 = vadd.f32 %v171_v36, %v115_v37  ;;  %v194_v41 = vmul.f32 %v115_v37, %v115_v37  ;;  %v136_v42 = vpop.f32.mrf.mxu2  ;;  %v148_v43 = vpop.f32.mrf.mxu3  ;;  %v198_v53 = vmul.f32 %v127_v38, %v127_v38 }
  0xa2   :  { %161 = vst [vmem:[#allocation2 + $0x38] sm:$0xff] %v127_v38  ;;  %v201_v1 = vmul.f32 %v136_v42, %v136_v42  ;;  %v205_v13 = vmul.f32 %v148_v43, %v148_v43 }
  0xa3   :  { %v173_v45 = vadd.f32 %v172_v40, %v118_v22  ;;  %v209_v46 = vadd.f32 %v208_v39, %v194_v41  ;;  %164 = vst [vmem:[#allocation2 + $0x50] sm:$0xff] %v136_v42  ;;  %v228_v22 = vlaneseq }
  0xa4   :  { %168 = vst [vmem:[#allocation2 + $0x70] sm:$0xff] %v148_v43 }
  0xa5   :  { %v210_v48 = vadd.f32 %v209_v46, %v195_v44  ;;  %v174_v49 = vadd.f32 %v173_v45, %v121_v24 }
  0xa7   :  { %v175_v50 = vadd.f32 %v174_v49, %v124_v28  ;;  %v211_v52 = vadd.f32 %v210_v48, %v196_v47 }
  0xa9   :  { %v212_v54 = vadd.f32 %v211_v52, %v197_v51  ;;  %v176_v55 = vadd.f32 %v175_v50, %v127_v38  ;;  %v139_v56 = vpop.f32.mrf.mxu2  ;;  %v151_v57 = vpop.f32.mrf.mxu3 }
  0xaa   :  { %165 = vst [vmem:[#allocation2 + $0x58] sm:$0xff] %v139_v56  ;;  %v202_v3 = vmul.f32 %v139_v56, %v139_v56  ;;  %v206_v15 = vmul.f32 %v151_v57, %v151_v57 }
  0xab   :  { %v177_v59 = vadd.f32 %v176_v55, %v130_v25  ;;  %v213_v60 = vadd.f32 %v212_v54, %v198_v53  ;;  %169 = vst [vmem:[#allocation2 + $0x78] sm:$0xff] %v151_v57 }
  0xac   :  { %247 = dma.vmem_to_hbm [thread:$0]  %s240_s26, 2048, %s242_s28, [#allocation3], %s358_s29, %s358_s29, %s359_s30  }
  0xad   :  { %v214_v62 = vadd.f32 %v213_v60, %v199_v58  ;;  %v178_v63 = vadd.f32 %v177_v59, %v133_v29 }
  0xaf   :  { %v179_v0 = vadd.f32 %v178_v63, %v136_v42  ;;  %v215_v2 = vadd.f32 %v214_v62, %v200_v61 }
  0xb1   :  { %v216_v4 = vadd.f32 %v215_v2, %v201_v1  ;;  %v180_v5 = vadd.f32 %v179_v0, %v139_v56 }
  0xb3   :  { %v181_v7 = vadd.f32 %v180_v5, %v460_v26  ;;  %v217_v8 = vadd.f32 %v216_v4, %v202_v3  ;;  %v229_v26 = vshrl.u32 %v228_v22, 7 }
  0xb5   :  { %v218_v10 = vadd.f32 %v217_v8, %v203_v6  ;;  %v182_v11 = vadd.f32 %v181_v7, %v145_v30  ;;  %vm231_vm2 = vcmp.eq.s32.totalorder %v229_v26, 1  ;;  %vm230_vm3 = vcmp.eq.s32.totalorder %v229_v26, 0 }
  0xb7   :  { %v183_v12 = vadd.f32 %v182_v11, %v148_v43  ;;  %v219_v14 = vadd.f32 %v218_v10, %v204_v9 }
  0xb9   :  { %v220_v16 = vadd.f32 %v219_v14, %v205_v13  ;;  %v184_v17 = vadd.f32 %v183_v12, %v151_v57 }
  0xbb   :  { %v185_v18 = vrot.slane %v184_v17, 4  ;;  %v221_v19 = vadd.f32 %v220_v16, %v206_v15 }
  0xbd   :  { %v186_v20 = vadd.f32 %v185_v18, %v184_v17  ;;  %v222_v21 = vrot.slane %v221_v19, 4 }
  0xbf   :  { %v187_v23 = vrot.slane %v186_v20, 2  ;;  %v223_v24 = vadd.f32 %v222_v21, %v221_v19 }
  0xc1   :  { %v188_v25 = vadd.f32 %v187_v23, %v186_v20  ;;  %v224_v27 = vrot.slane %v223_v24, 2 }
  0xc3   :  { %v225_v28 = vadd.f32 %v224_v27, %v223_v24  ;;  %v189_v29 = vrot.slane %v188_v25, 1 }
  0xc5   :  { %v226_v31 = vrot.slane %v225_v28, 1  ;;  %v190_v32 = vadd.f32 %v189_v29, %v188_v25 }
  0xc7   :  { %v227_v30 = vadd.f32 %v226_v31, %v225_v28 }
  0xc9   :  { %v232_v33 = vsel %vm231_vm2, %v227_v30, 0.0 }
  0xca   :  { %v233_v34 = vsel %vm230_vm3, %v190_v32, %v232_v33 }
  0xcb   :  { %234 = vst [vmem:[#allocation4] sm:$0xff] %v233_v34 }
  0xcc   :  { %258 = dma.vmem_to_hbm [thread:$0]  %s254_s4, 128, %s256_s7, [#allocation5]  }
  0xcd   :  { %353 = dma.done.wait [#allocation3], 2048  }
  0xce   :  { %354 = vsyncadd [#allocation3], 4294965248 }
  0xcf   :  { %355 = dma.done.wait [#allocation5], 128  }
  0xd0   :  { %356 = vsyncadd [#allocation5], 4294967168 }
  0xd1   :  { %267 = vsyncpa [#allocation3], 1 }
  0xd2   :  { %268 = vsyncpa [#allocation5], 1 }

</bundles_post_ra>
